<compile_context>
chip_gen: v7x
topology: tpu7x:2x2x1
jax: 0.10.0
libtpu: 0.0.40
codegen_flags: <defaults>
</compile_context>

<pallas_src>
import math
import functools

import jax
import jax.numpy as jnp
from jax import lax
from jax.experimental import pallas as pl
from jax.experimental.pallas import tpu as pltpu


def _round_up(x, m):
    return (x + m - 1) // m * m


def _pad2(a, rows, cols):
    pr, pc = rows - a.shape[0], cols - a.shape[1]
    if pr or pc:
        a = jnp.pad(a, ((0, pr), (0, pc)))
    return a


def _noisy_linear_kernel(x_ref, wmu_ref, wsig_ref, eout_ref, ein_ref, b_ref, o_ref):
    """o[i,j] += x[i,:] @ (mu + sigma * (eps_out ⊗ eps_in))[j,:].T  (+bias at last k)."""
    k = pl.program_id(2)

    @pl.when(k == 0)
    def _():
        o_ref[...] = jnp.zeros_like(o_ref)

    # Rebuild the rank-1 noise tile on the VPU: (tn, 1) * (1, tk) -> (tn, tk), f32.
    weps = eout_ref[...] * ein_ref[...]
    # Fuse noise into the weight tile in f32, then cast to the MXU input dtype.
    w = wmu_ref[...].astype(jnp.float32) + wsig_ref[...].astype(jnp.float32) * weps

    # Contract the last dim of both operands on the MXU -- (tm,tk)x(tn,tk)->(tm,tn),
    # i.e. x @ w.T with no explicit transpose. f32 accumulation into o_ref.
    o_ref[...] += lax.dot_general(
        x_ref[...], w.astype(x_ref.dtype),
        dimension_numbers=(((1,), (1,)), ((), ())),
        preferred_element_type=jnp.float32)

    @pl.when(k == pl.num_programs(2) - 1)
    def _():
        o_ref[...] += b_ref[...]


def _linear_kernel(x_ref, w_ref, b_ref, o_ref):
    """Eval-mode path: plain linear with mu weights / mu bias only."""
    k = pl.program_id(2)

    @pl.when(k == 0)
    def _():
        o_ref[...] = jnp.zeros_like(o_ref)

    o_ref[...] += lax.dot_general(
        x_ref[...], w_ref[...].astype(x_ref.dtype),
        dimension_numbers=(((1,), (1,)), ((), ())),
        preferred_element_type=jnp.float32)

    @pl.when(k == pl.num_programs(2) - 1)
    def _():
        o_ref[...] += b_ref[...]


def _vmem_capacity_bytes():
    try:
        return int(pltpu.get_tpu_info().vmem_capacity_bytes)
    except Exception:
        return 64 << 20   # conservative fallback (v7x per-TensorCore VMEM)


def noisy_linear_forward(x, weight_mu, weight_sigma, eps_in, eps_out,
                         bias_mu, bias_sigma, training=True, use_bf16=True,
                         block_m=256, block_n=None, block_k=None):
    """Pallas implementation of NoisyLinear.forward (training or eval)."""
    B, in_features = x.shape
    out_features = weight_mu.shape[0]

    # Generation-aware default tiles: bigger K/N tiles on 128-MiB-VMEM parts
    # (v5e/v6e); conservative on 64-MiB parts (v7x).
    vmem_cap = _vmem_capacity_bytes()
    big_vmem = vmem_cap >= (100 << 20)
    if block_n is None:
        block_n = 512 if (big_vmem and out_features >= 512) else 256
    if block_k is None:
        block_k = 1024 if big_vmem else 512

    # Lane-dense tile sizes: tm multiple of 8, tn/tk multiples of 128.
    tm = min(_round_up(B, 8), block_m)
    tn = min(_round_up(out_features, 128), block_n)
    tk = min(_round_up(in_features, 128), block_k)

    Mp = _round_up(B, tm)
    Np = _round_up(out_features, tn)
    Kp = _round_up(in_features, tk)
    grid = (Mp // tm, Np // tn, Kp // tk)

    compute_dtype = jnp.bfloat16 if use_bf16 else x.dtype

    # Zero-pad to tile multiples (zeros along K contribute nothing; padded
    # output rows/cols are sliced off at the end).
    xp = _pad2(x, Mp, Kp).astype(compute_dtype)
    wmu = _pad2(weight_mu, Np, Kp).astype(compute_dtype)

    # Fused bias: an N-length vector, essentially free to build in the wrapper.
    b_eff = bias_mu + bias_sigma * eps_out if training else bias_mu
    b_eff = _pad2(b_eff.reshape(1, out_features).astype(jnp.float32), 1, Np)

    x_spec = pl.BlockSpec((tm, tk), lambda i, j, k: (i, k))
    w_spec = pl.BlockSpec((tn, tk), lambda i, j, k: (j, k))
    b_spec = pl.BlockSpec((1, tn), lambda i, j, k: (0, j))
    o_spec = pl.BlockSpec((tm, tn), lambda i, j, k: (i, j))

    # VMEM requirement: double-buffered inputs + double-buffered resident output.
    ib = jnp.dtype(compute_dtype).itemsize
    n_w = 2 if training else 1
    required = (2 * (tm * tk * ib + n_w * tn * tk * ib)    # x + weight streams
                + 2 * (tn + tk + tn) * 4                   # eps_out/eps_in/bias vectors
                + 2 * tm * tn * 4)                         # f32 output block
    # Never clamp below the computed requirement (1.3x margin for compiler scratch).
    vmem_limit = max(int(required * 1.3), 16 << 20)

    # TODO(synk): on v7x, switch the N grid axis to pltpu.CORE_PARALLEL (or use
    # pl.core_map over a 2-TensorCore mesh) so both cores actually split the work.
    compiler_params = pltpu.CompilerParams(
        dimension_semantics=("parallel", "parallel", "arbitrary"),
        vmem_limit_bytes=vmem_limit)

    if training:
        wsig = _pad2(weight_sigma, Np, Kp).astype(compute_dtype)
        eo = _pad2(eps_out.reshape(out_features, 1).astype(jnp.float32), Np, 1)
        ei = _pad2(eps_in.reshape(1, in_features).astype(jnp.float32), 1, Kp)
        eo_spec = pl.BlockSpec((tn, 1), lambda i, j, k: (j, 0))
        ei_spec = pl.BlockSpec((1, tk), lambda i, j, k: (0, k))
        # TODO(synk): if profiling shows exposed weight DMA at small tm, deepen the
        # weight streams with pipeline_mode=pl.Buffered(3).
        yp = pl.pallas_call(
            _noisy_linear_kernel,
            out_shape=jax.ShapeDtypeStruct((Mp, Np), jnp.float32),
            grid_spec=pltpu.PrefetchScalarGridSpec(
                num_scalar_prefetch=0, grid=grid,
                in_specs=[x_spec, w_spec, w_spec, eo_spec, ei_spec, b_spec],
                out_specs=o_spec),
            compiler_params=compiler_params,
        )(xp, wmu, wsig, eo, ei, b_eff)
    else:
        # Eval: mu-only plain linear; no sigma / epsilon streamed at all.
        yp = pl.pallas_call(
            _linear_kernel,
            out_shape=jax.ShapeDtypeStruct((Mp, Np), jnp.float32),
            grid_spec=pltpu.PrefetchScalarGridSpec(
                num_scalar_prefetch=0, grid=grid,
                in_specs=[x_spec, w_spec, b_spec],
                out_specs=o_spec),
            compiler_params=compiler_params,
        )(xp, wmu, b_eff)

    # TODO(synk): when Mp//tm is large (or many forwards reuse one reset_noise),
    # pre-materialize w_eff = mu + sigma*(eps_out ⊗ eps_in) once with a cheap
    # elementwise pass and run the eval (plain-linear) kernel, so the noise
    # fusion and weight streaming are not repeated per M tile.
    return yp[:B, :out_features].astype(x.dtype)


def _scale_noise(key, size):
    # PyTorch: x = randn(size); return x.sign() * sqrt(|x|)
    x = jax.random.normal(key, (size,), dtype=jnp.float32)
    return jnp.sign(x) * jnp.sqrt(jnp.abs(x))


def init_noisy_linear(key, in_features, out_features, sigma_init=0.017):
    """Parameter + factorized-noise init mirroring the PyTorch module."""
    k_wmu, k_bmu, k_ein, k_eout = jax.random.split(key, 4)
    mu_range = 1.0 / math.sqrt(in_features)

    weight_mu = jax.random.uniform(
        k_wmu, (out_features, in_features), jnp.float32, -mu_range, mu_range)
    weight_sigma = jnp.full((out_features, in_features), sigma_init, jnp.float32)
    bias_mu = jax.random.uniform(
        k_bmu, (out_features,), jnp.float32, -mu_range, mu_range)
    bias_sigma = jnp.full((out_features,), sigma_init, jnp.float32)

    # reset_noise(): factorized Gaussian noise (kept factorized; the kernel
    # rebuilds weight_epsilon = eps_out ⊗ eps_in on the fly).
    eps_in = _scale_noise(k_ein, in_features)
    eps_out = _scale_noise(k_eout, out_features)

    return dict(weight_mu=weight_mu, weight_sigma=weight_sigma,
                bias_mu=bias_mu, bias_sigma=bias_sigma,
                eps_in=eps_in, eps_out=eps_out)


def _ref_forward(x, p, training):
    if training:
        weight_epsilon = p["eps_out"][:, None] * p["eps_in"][None, :]
        w = p["weight_mu"] + p["weight_sigma"] * weight_epsilon
        b = p["bias_mu"] + p["bias_sigma"] * p["eps_out"]
    else:
        w, b = p["weight_mu"], p["bias_mu"]
    return x @ w.T + b


if __name__ == "__main__":
    key = jax.random.PRNGKey(0)
    k_params, k_x, k_params2, k_x2 = jax.random.split(key, 4)

    # Case 1: small module-like shapes, exact f32 path (sub-tile; padding path).
    batch, in_features, out_features = 8, 32, 64
    params = init_noisy_linear(k_params, in_features, out_features)
    x = jax.random.normal(k_x, (batch, in_features), dtype=jnp.float32)

    fwd_train_f32 = jax.jit(functools.partial(
        noisy_linear_forward, training=True, use_bf16=False))
    fwd_eval_f32 = jax.jit(functools.partial(
        noisy_linear_forward, training=False, use_bf16=False))

    args = (params["weight_mu"], params["weight_sigma"], params["eps_in"],
            params["eps_out"], params["bias_mu"], params["bias_sigma"])

    y = fwd_train_f32(x, *args)
    jax.block_until_ready(y)
    assert y.shape == (batch, out_features)
    assert jnp.allclose(y, _ref_forward(x, params, True), atol=1e-4, rtol=1e-4)

    y_eval = fwd_eval_f32(x, *args)
    jax.block_until_ready(y_eval)
    assert jnp.allclose(y_eval, _ref_forward(x, params, False),
                        atol=1e-4, rtol=1e-4)

    # Case 2: multi-tile grid + padding on every dim + bf16 MXU path.
    # Grid = (2, 2, 3) with block (8, 128, 128); Mp/Np/Kp = 16/256/384.
    batch2, in2, out2 = 13, 300, 200
    params2 = init_noisy_linear(k_params2, in2, out2)
    x2 = jax.random.normal(k_x2, (batch2, in2), dtype=jnp.float32)
    fwd_tiled_bf16 = jax.jit(functools.partial(
        noisy_linear_forward, training=True, use_bf16=True,
        block_m=8, block_n=128, block_k=128))
    args2 = (params2["weight_mu"], params2["weight_sigma"], params2["eps_in"],
             params2["eps_out"], params2["bias_mu"], params2["bias_sigma"])
    y2 = fwd_tiled_bf16(x2, *args2)
    jax.block_until_ready(y2)
    assert y2.shape == (batch2, out2)
    assert jnp.allclose(y2, _ref_forward(x2, params2, True),
                        atol=3e-2, rtol=3e-2)

    print("KERNEL_OK")
</pallas_src>

<mosaic_0001>
module attributes {stable_mosaic.version = 11 : i64} {
  func.func @_noisy_linear_kernel(%arg0: i32, %arg1: i32, %arg2: i32, %arg3: memref<8x128xf32, #tpu.memory_space<vmem>>, %arg4: memref<128x128xf32, #tpu.memory_space<vmem>>, %arg5: memref<128x128xf32, #tpu.memory_space<vmem>>, %arg6: memref<128x1xf32, #tpu.memory_space<vmem>>, %arg7: memref<1x128xf32, #tpu.memory_space<vmem>>, %arg8: memref<1x128xf32, #tpu.memory_space<vmem>>, %arg9: memref<8x128xf32, #tpu.memory_space<vmem>>) attributes {dimension_semantics = [#tpu.dimension_semantics<parallel>, #tpu.dimension_semantics<parallel>, #tpu.dimension_semantics<arbitrary>], iteration_bounds = array<i64: 1, 1, 1>, scalar_prefetch = 0 : i64, scratch_operands = 0 : i64, tpu.core_type = #tpu.core_type<tc>, window_params = [{transform_indices = @transform_0, window_bounds = array<i64: 8, 128>}, {transform_indices = @transform_1, window_bounds = array<i64: 128, 128>}, {transform_indices = @transform_2, window_bounds = array<i64: 128, 128>}, {transform_indices = @transform_3, window_bounds = array<i64: 128, 1>}, {transform_indices = @transform_4, window_bounds = array<i64: 1, 128>}, {transform_indices = @transform_5, window_bounds = array<i64: 1, 128>}, {transform_indices = @transform_6, window_bounds = array<i64: 8, 128>}]} {
    %c0_i32 = arith.constant 0 : i32
    %0 = arith.cmpi eq, %arg2, %c0_i32 : i32
    %1 = arith.extui %0 : i1 to i32
    %c0_i32_0 = arith.constant 0 : i32
    %2 = arith.cmpi ne, %1, %c0_i32_0 : i32
    scf.if %2 {
      %cst_16 = arith.constant 0.000000e+00 : f32
      %20 = vector.broadcast %cst_16 : f32 to vector<8x128xf32>
      %c0_17 = arith.constant 0 : index
      %c0_18 = arith.constant 0 : index
      %21 = vector.load %arg9[%c0_17, %c0_18] : memref<8x128xf32, #tpu.memory_space<vmem>>, vector<8x128xf32>
      tpu.vector_store %arg9[%c0_17, %c0_18], %20 {strides = array<i32>} : memref<8x128xf32, #tpu.memory_space<vmem>>, vector<8x128xf32>,
    } else {
    }
    %c0 = arith.constant 0 : index
    %c0_1 = arith.constant 0 : index
    %3 = vector.load %arg6[%c0, %c0_1] : memref<128x1xf32, #tpu.memory_space<vmem>>, vector<128x1xf32>
    %c0_2 = arith.constant 0 : index
    %c0_3 = arith.constant 0 : index
    %4 = vector.load %arg7[%c0_2, %c0_3] : memref<1x128xf32, #tpu.memory_space<vmem>>, vector<1x128xf32>
    %5 = vector.broadcast %3 : vector<128x1xf32> to vector<128x128xf32>
    %6 = vector.broadcast %4 : vector<1x128xf32> to vector<128x128xf32>
    %7 = arith.mulf %5, %6 : vector<128x128xf32>
    %c0_4 = arith.constant 0 : index
    %c0_5 = arith.constant 0 : index
    %8 = vector.load %arg4[%c0_4, %c0_5] : memref<128x128xf32, #tpu.memory_space<vmem>>, vector<128x128xf32>
    %c0_6 = arith.constant 0 : index
    %c0_7 = arith.constant 0 : index
    %9 = vector.load %arg5[%c0_6, %c0_7] : memref<128x128xf32, #tpu.memory_space<vmem>>, vector<128x128xf32>
    %10 = arith.mulf %9, %7 : vector<128x128xf32>
    %11 = arith.addf %8, %10 : vector<128x128xf32>
    %c0_8 = arith.constant 0 : index
    %c0_9 = arith.constant 0 : index
    %12 = vector.load %arg9[%c0_8, %c0_9] : memref<8x128xf32, #tpu.memory_space<vmem>>, vector<8x128xf32>
    %c0_10 = arith.constant 0 : index
    %c0_11 = arith.constant 0 : index
    %13 = vector.load %arg3[%c0_10, %c0_11] : memref<8x128xf32, #tpu.memory_space<vmem>>, vector<8x128xf32>
    %cst = arith.constant dense<0.000000e+00> : vector<8x128xf32>
    %14 = tpu.matmul %13, %11, %cst {dimension_numbers = #tpu.dot_dimension_numbers<[1], [1], [0], [0], [0, 0, 1, 0], [], []>} : vector<8x128xf32>, vector<128x128xf32>, vector<8x128xf32> -> vector<8x128xf32>
    %15 = arith.addf %12, %14 : vector<8x128xf32>
    %c0_12 = arith.constant 0 : index
    %c0_13 = arith.constant 0 : index
    %16 = vector.load %arg9[%c0_12, %c0_13] : memref<8x128xf32, #tpu.memory_space<vmem>>, vector<8x128xf32>
    tpu.vector_store %arg9[%c0_12, %c0_13], %15 {strides = array<i32>} : memref<8x128xf32, #tpu.memory_space<vmem>>, vector<8x128xf32>,
    %c0_i32_14 = arith.constant 0 : i32
    %17 = arith.cmpi eq, %arg2, %c0_i32_14 : i32
    %18 = arith.extui %17 : i1 to i32
    %c0_i32_15 = arith.constant 0 : i32
    %19 = arith.cmpi ne, %18, %c0_i32_15 : i32
    scf.if %19 {
      %c0_16 = arith.constant 0 : index
      %c0_17 = arith.constant 0 : index
      %20 = vector.load %arg9[%c0_16, %c0_17] : memref<8x128xf32, #tpu.memory_space<vmem>>, vector<8x128xf32>
      %c0_18 = arith.constant 0 : index
      %c0_19 = arith.constant 0 : index
      %21 = vector.load %arg8[%c0_18, %c0_19] : memref<1x128xf32, #tpu.memory_space<vmem>>, vector<1x128xf32>
      %22 = vector.broadcast %21 : vector<1x128xf32> to vector<8x128xf32>
      %23 = arith.addf %20, %22 : vector<8x128xf32>
      %c0_20 = arith.constant 0 : index
      %c0_21 = arith.constant 0 : index
      %24 = vector.load %arg9[%c0_20, %c0_21] : memref<8x128xf32, #tpu.memory_space<vmem>>, vector<8x128xf32>
      tpu.vector_store %arg9[%c0_20, %c0_21], %23 {strides = array<i32>} : memref<8x128xf32, #tpu.memory_space<vmem>>, vector<8x128xf32>,
    } else {
    }
    return
  }
  func.func @transform_0(%arg0: i32, %arg1: i32, %arg2: i32) -> (i32, i32) {
    %c0_i32 = arith.constant 0 : i32
    return %arg0, %arg2 : i32, i32
  }
  func.func @transform_1(%arg0: i32, %arg1: i32, %arg2: i32) -> (i32, i32) {
    %c0_i32 = arith.constant 0 : i32
    return %arg1, %arg2 : i32, i32
  }
  func.func @transform_2(%arg0: i32, %arg1: i32, %arg2: i32) -> (i32, i32) {
    %c0_i32 = arith.constant 0 : i32
    return %arg1, %arg2 : i32, i32
  }
  func.func @transform_3(%arg0: i32, %arg1: i32, %arg2: i32) -> (i32, i32) {
    %c0_i32 = arith.constant 0 : i32
    %c0_i32_0 = arith.constant 0 : i32
    return %arg1, %c0_i32 : i32, i32
  }
  func.func @transform_4(%arg0: i32, %arg1: i32, %arg2: i32) -> (i32, i32) {
    %c0_i32 = arith.constant 0 : i32
    %c0_i32_0 = arith.constant 0 : i32
    return %c0_i32, %arg2 : i32, i32
  }
  func.func @transform_5(%arg0: i32, %arg1: i32, %arg2: i32) -> (i32, i32) {
    %c0_i32 = arith.constant 0 : i32
    %c0_i32_0 = arith.constant 0 : i32
    return %c0_i32, %arg1 : i32, i32
  }
  func.func @transform_6(%arg0: i32, %arg1: i32, %arg2: i32) -> (i32, i32) {
    %c0_i32 = arith.constant 0 : i32
    return %arg0, %arg1 : i32, i32
  }
}

</mosaic_0001>

<bundles_post_ra>
// kernel: noisy_linear_forward.1
= control target key start
LH: loop header
LB: loop body
LE: loop exit
PB: predicated region body
PF: predicated region fallthrough
CT: control target
= control target key end

     0   :  { %v422_v2 = vmov 0   ;;  %s653_s0 = inlined_call_operand.vmem [shape: f32[8,128], index: 0, kind: input, shape index: {}]   ;;  %s654_s1 = inlined_call_operand.vmem [shape: f32[128,128], index: 1, kind: input, shape index: {}]   ;;  %s655_s2 = inlined_call_operand.vmem [shape: f32[128,128], index: 2, kind: input, shape index: {}]   ;;  %s656_s3 = inlined_call_operand.vmem [shape: f32[128,1], index: 3, kind: input, shape index: {}]   ;;  %s657_s4 = inlined_call_operand.vmem [shape: f32[1,128], index: 4, kind: input, shape index: {}]   ;;  %s658_s5 = inlined_call_operand.vmem [shape: f32[1,128], index: 5, kind: input, shape index: {}]   ;;  %s659_s6 = inlined_call_operand.hbm [shape: f32[8,128], index: 6, kind: output, shape index: {}]  }
   0x1   :  { %v31_v0 = vld [vmem:[%s656_s3 + $0x10] sm:$0xff]  ;;  %v29_v1 = vld [vmem:[%s656_s3] sm:$0xff]  ;;  %397 = vset.pattern.permute.xlu1 %v422_v2  ;;  %396 = vset.pattern.permute.xlu0 %v422_v2  ;;  %v32_v3 = vld [vmem:[%s656_s3 + $0x18] sm:$0xff] }
   0x2   :  { %58 = vperm.xlu1 %397, %v31_v0   ;;  %48 = vperm.xlu0 %396, %v29_v1   ;;  %v30_v4 = vld [vmem:[%s656_s3 + $0x8] sm:$0xff]  ;;  %v33_v6 = vld [vmem:[%s656_s3 + $0x20] sm:$0xff] }
   0x3   :  { %v34_v5 = vld [vmem:[%s656_s3 + $0x28] sm:$0xff] }
   0x6   :  { %63 = vperm.xlu1 %397, %v32_v3   ;;  %53 = vperm.xlu0 %396, %v30_v4  }
   0x7   :  { %11 = vsyncpa [#allocation3], 0  ;;  %v36_v7 = vld [vmem:[%s656_s3 + $0x38] sm:$0xff]  ;;  %v35_v8 = vld [vmem:[%s656_s3 + $0x30] sm:$0xff]  ;;  %v423_v9 = vmov 0.0|0.0   ;;  %vm424_vm0 = vmmov 0  }
   0x8   :  { %367 = vmatprep.subr.bf16.mxu0 %v423_v9  ;;  %v38_v10 = vld [vmem:[%s656_s3 + $0x48] sm:$0xff]  ;;  %v37_v11 = vld [vmem:[%s656_s3 + $0x40] sm:$0xff]  ;;  %v40_v12 = vld [vmem:[%s656_s3 + $0x58] sm:$0xff]  ;;  %v425_v18 = vmov 0.0   ;;  %s426_s20 = smov [#allocation2]  }
   0x9   :  { %v39_v13 = vld [vmem:[%s656_s3 + $0x50] sm:$0xff]  ;;  %v42_v14 = vld [vmem:[%s656_s3 + $0x68] sm:$0xff]  ;;  %v41_v15 = vld [vmem:[%s656_s3 + $0x60] sm:$0xff]  ;;  %364 = vmatprep.mubr.msk.f32.mxu0 %vm424_vm0, %v425_v18  ;;  %s305_s21 = sshll.u32 %s426_s20, 4  ;;  %s306_s21 = int_to_ptr.vmem [resolvable:$true] %s305_s21 }
   0xa   :  { %73 = vperm.xlu1 %397, %v34_v5   ;;  %68 = vperm.xlu0 %396, %v33_v6   ;;  %v44_v16 = vld [vmem:[%s656_s3 + $0x78] sm:$0xff]  ;;  %v43_v17 = vld [vmem:[%s656_s3 + $0x70] sm:$0xff]  ;;  %v514_v19 = vld [vmem:[%s657_s4] ss:$0 sm:$0xff]  ;;  %p403_p1 = scmp.lt.s32.totalorder %s306_s21, %s306_s21 }
   0xb   :  { %v164_v23 = vld [vmem:[%s655_s2] sm:$0xff]  ;;  %v165_v24 = vld [vmem:[%s655_s2 + $0x8] sm:$0xff]  ;;  %v166_v34 = vld [vmem:[%s655_s2 + $0x10] sm:$0xff] }
   0xc   :  { %v148_v29 = vld [vmem:[%s654_s1] sm:$0xff]  ;;  %v149_v30 = vld [vmem:[%s654_s1 + $0x8] sm:$0xff]  ;;  %v167_v35 = vld [vmem:[%s655_s2 + $0x18] sm:$0xff] }
   0xd   :  { %v150_v41 = vld [vmem:[%s654_s1 + $0x10] sm:$0xff]  ;;  %v151_v42 = vld [vmem:[%s654_s1 + $0x18] sm:$0xff]  ;;  %v169_v49 = vld [vmem:[%s655_s2 + $0x28] sm:$0xff] }
   0xe   :  { %83 = vperm.xlu1 %397, %v36_v7   ;;  %78 = vperm.xlu0 %396, %v35_v8   ;;  %v168_v50 = vld [vmem:[%s655_s2 + $0x20] sm:$0xff]  ;;  %v153_v54 = vld [vmem:[%s654_s1 + $0x28] sm:$0xff]  ;;  %v171_v62 = vld [vmem:[%s655_s2 + $0x38] sm:$0xff] }
   0xf   :  { %v152_v55 = vld [vmem:[%s654_s1 + $0x20] sm:$0xff]  ;;  %v170_v63 = vld [vmem:[%s655_s2 + $0x30] sm:$0xff]  ;;  %v155_v3 = vld [vmem:[%s654_s1 + $0x38] sm:$0xff] }
  0x10   :  { %v154_v4 = vld [vmem:[%s654_s1 + $0x30] sm:$0xff]  ;;  %v156_v18 = vld [vmem:[%s654_s1 + $0x40] sm:$0xff] }
  0x12   :  { %93 = vperm.xlu1 %397, %v38_v10   ;;  %88 = vperm.xlu0 %396, %v37_v11  }
  0x16   :  { %103 = vperm.xlu1 %397, %v40_v12   ;;  %98 = vperm.xlu0 %396, %v39_v13   ;;  %v173_v12 = vld [vmem:[%s655_s2 + $0x48] sm:$0xff]  ;;  %v172_v13 = vld [vmem:[%s655_s2 + $0x40] sm:$0xff] }
  0x1a   :  { %113 = vperm.xlu1 %397, %v42_v14   ;;  %108 = vperm.xlu0 %396, %v41_v15  }
  0x1e   :  { %123 = vperm.xlu1 %397, %v44_v16   ;;  %118 = vperm.xlu0 %396, %v43_v17   ;;  %v157_v17 = vld [vmem:[%s654_s1 + $0x48] sm:$0xff] }
  0x81   :  { %v59_v20 = vpop.permute.xlu1 %58  ;;  %v49_v21 = vpop.permute.xlu0 %48 }
  0x82   :  { %v132_v22 = vmul.f32 %v514_v19, %v49_v21  ;;  %v134_v31 = vmul.f32 %v514_v19, %v59_v20 }
  0x84   :  { %v180_v26 = vmul.f32 %v164_v23, %v132_v22  ;;  %v182_v38 = vmul.f32 %v166_v34, %v134_v31  ;;  %v159_v31 = vld [vmem:[%s654_s1 + $0x58] sm:$0xff] }
  0x85   :  { %v54_v25 = vpop.permute.xlu0 %53  ;;  %v64_v28 = vpop.permute.xlu1 %63 }
  0x86   :  { %v133_v27 = vmul.f32 %v514_v19, %v54_v25  ;;  %v135_v32 = vmul.f32 %v514_v19, %v64_v28  ;;  %v196_v36 = vadd.f32 %v180_v26, %v148_v29  ;;  %v198_v45 = vadd.f32 %v182_v38, %v150_v41  ;;  %v175_v26 = vld [vmem:[%s655_s2 + $0x58] sm:$0xff] }
  0x88   :  { %v181_v33 = vmul.f32 %v165_v24, %v133_v27  ;;  %v183_v39 = vmul.f32 %v167_v35, %v135_v32  ;;  %v174_v27 = vld [vmem:[%s655_s2 + $0x50] sm:$0xff] }
  0x89   :  { %v74_v43 = vpop.permute.xlu1 %73  ;;  %v69_v44 = vpop.permute.xlu0 %68  ;;  %v158_v32 = vld [vmem:[%s654_s1 + $0x50] sm:$0xff] }
  0x8a   :  { %v197_v37 = vadd.f32 %v181_v33, %v149_v30  ;;  %v199_v46 = vadd.f32 %v183_v39, %v151_v42  ;;  %v137_v47 = vmul.f32 %v514_v19, %v74_v43  ;;  %v136_v48 = vmul.f32 %v514_v19, %v69_v44  ;;  %v177_v39 = vld [vmem:[%s655_s2 + $0x68] sm:$0xff] }
  0x8b   :  { %v161_v44 = vld [vmem:[%s654_s1 + $0x68] sm:$0xff] }
  0x8c   :  { %v368_v40 = vpack.c.bf16 %v197_v37, %v196_v36  ;;  %v185_v51 = vmul.f32 %v169_v49, %v137_v47  ;;  %v184_v52 = vmul.f32 %v168_v50, %v136_v48  ;;  %v371_v53 = vpack.c.bf16 %v199_v46, %v198_v45  ;;  %v160_v45 = vld [vmem:[%s654_s1 + $0x60] sm:$0xff] }
  0x8d   :  { %v84_v56 = vpop.permute.xlu1 %83  ;;  %v79_v57 = vpop.permute.xlu0 %78 }
  0x8e   :  { %369 = vmatpush3.bf16.xpose.msra.mxu0 %v368_v40  ;;  %v201_v58 = vadd.f32 %v185_v51, %v153_v54  ;;  %v200_v59 = vadd.f32 %v184_v52, %v152_v55  ;;  %v139_v60 = vmul.f32 %v514_v19, %v84_v56  ;;  %v138_v61 = vmul.f32 %v514_v19, %v79_v57  ;;  %v176_v40 = vld [vmem:[%s655_s2 + $0x60] sm:$0xff]  ;;  %v179_v52 = vld [vmem:[%s655_s2 + $0x78] sm:$0xff] }
  0x8f   :  { %370 = vmatprep.subr.bf16.mxu0 %v423_v9  ;;  %v163_v57 = vld [vmem:[%s654_s1 + $0x78] sm:$0xff] }
  0x90   :  { %v187_v0 = vmul.f32 %v171_v62, %v139_v60  ;;  %v186_v1 = vmul.f32 %v170_v63, %v138_v61  ;;  %v374_v2 = vpack.c.bf16 %v201_v58, %v200_v59  ;;  %v162_v58 = vld [vmem:[%s654_s1 + $0x70] sm:$0xff]  ;;  %v213_v61 = vld [vmem:[%s653_s0] sm:$0xff]  ;;  %s398_s1 = scalar_lea.vmem %s306_s21, 128 }
  0x91   :  { %v94_v5 = vpop.permute.xlu1 %93  ;;  %v89_v6 = vpop.permute.xlu0 %88  ;;  %v314_v63 = vld [vmem:[%s658_s5] ss:$0 sm:$0xff]  ;;  %p399_p0 = scmp.ne.s32.totalorder %s306_s21, %s398_s1  ;;  %p404_p2 = scmp.lt.s32.totalorder %s398_s1, %s398_s1 }
  0x92   :  { %v203_v7 = vadd.f32 %v187_v0, %v155_v3  ;;  %v202_v8 = vadd.f32 %v186_v1, %v154_v4  ;;  %v141_v10 = vmul.f32 %v514_v19, %v94_v5  ;;  %v140_v11 = vmul.f32 %v514_v19, %v89_v6 }
  0x93   :  { %p405_p3 = por %p404_p2, %p403_p1 }
  0x94   :  { %v189_v14 = vmul.f32 %v173_v12, %v141_v10  ;;  %v188_v15 = vmul.f32 %v172_v13, %v140_v11  ;;  %v377_v16 = vpack.c.bf16 %v203_v7, %v202_v8 }
  0x95   :  { %v104_v20 = vpop.permute.xlu1 %103  ;;  %v99_v21 = vpop.permute.xlu0 %98  ;;  %p406_p4 = pnand %p405_p3, %p399_p0 }
  0x96   :  { %372 = vmatpush3.bf16.xpose.msra.mxu0 %v371_v53  ;;  %v205_v22 = vadd.f32 %v189_v14, %v157_v17  ;;  %v204_v23 = vadd.f32 %v188_v15, %v156_v18  ;;  %v143_v24 = vmul.f32 %v514_v19, %v104_v20  ;;  %v142_v25 = vmul.f32 %v514_v19, %v99_v21  ;;  %v178_v53 = vld [vmem:[%s655_s2 + $0x70] sm:$0xff] }
  0x97   :  { %373 = vmatprep.subr.bf16.mxu0 %v423_v9 }
  0x98   :  { %v191_v28 = vmul.f32 %v175_v26, %v143_v24  ;;  %v190_v29 = vmul.f32 %v174_v27, %v142_v25  ;;  %v380_v30 = vpack.c.bf16 %v205_v22, %v204_v23 }
  0x99   :  { %v114_v33 = vpop.permute.xlu1 %113  ;;  %v109_v34 = vpop.permute.xlu0 %108 }
  0x9a   :  { %v207_v35 = vadd.f32 %v191_v28, %v159_v31  ;;  %v206_v36 = vadd.f32 %v190_v29, %v158_v32  ;;  %v145_v37 = vmul.f32 %v514_v19, %v114_v33  ;;  %v144_v38 = vmul.f32 %v514_v19, %v109_v34 }
  0x9c   :  { %v193_v41 = vmul.f32 %v177_v39, %v145_v37  ;;  %v192_v42 = vmul.f32 %v176_v40, %v144_v38  ;;  %v383_v43 = vpack.c.bf16 %v207_v35, %v206_v36 }
  0x9d   :  { %v124_v46 = vpop.permute.xlu1 %123  ;;  %v119_v47 = vpop.permute.xlu0 %118 }
  0x9e   :  { %375 = vmatpush3.bf16.xpose.msra.mxu0 %v374_v2  ;;  %v209_v48 = vadd.f32 %v193_v41, %v161_v44  ;;  %v208_v49 = vadd.f32 %v192_v42, %v160_v45  ;;  %v147_v50 = vmul.f32 %v514_v19, %v124_v46  ;;  %v146_v51 = vmul.f32 %v514_v19, %v119_v47 }
  0x9f   :  { %376 = vmatprep.subr.bf16.mxu0 %v423_v9 }
  0xa0   :  { %v195_v54 = vmul.f32 %v179_v52, %v147_v50  ;;  %v194_v55 = vmul.f32 %v178_v53, %v146_v51  ;;  %v386_v56 = vpack.c.bf16 %v209_v48, %v208_v49 }
  0xa2   :  { %v211_v19 = vadd.f32 %v195_v54, %v163_v57  ;;  %v210_v59 = vadd.f32 %v194_v55, %v162_v58 }
  0xa4   :  { %v389_v60 = vpack.c.bf16 %v211_v19, %v210_v59 }
  0xa6   :  { %378 = vmatpush3.bf16.xpose.msra.mxu0 %v377_v16 }
  0xa7   :  { %379 = vmatprep.subr.bf16.mxu0 %v423_v9 }
  0xae   :  { %381 = vmatpush3.bf16.xpose.msra.mxu0 %v380_v30 }
  0xaf   :  { %382 = vmatprep.subr.bf16.mxu0 %v423_v9 }
  0xb6   :  { %384 = vmatpush3.bf16.xpose.msra.mxu0 %v383_v43 }
  0xb7   :  { %385 = vmatprep.subr.bf16.mxu0 %v423_v9 }
  0xbe   :  { %387 = vmatpush3.bf16.xpose.msra.mxu0 %v386_v56 }
  0xbf   :  { %388 = vmatprep.subr.bf16.mxu0 %v423_v9 }
  0xc6   :  { %390 = vmatpush3.bf16.xpose.msra.mxu0 %v389_v60 }
  0xcd   :  { %365 = vmatmul.mubr.f32.vlgmr.msra.gmra.mrb[0].mxu0 %v213_v61 }
 0x1a0   :  { %v280_v62 = vpop.f32.mrb[0].mxu0 }
 0x1a1   :  { %v366_v0 = vpop.f32.mrb[1].mxu0  ;;  %v297_v1 = vadd.f32 %v314_v63, %v280_v62 }
 0x1a3   :  { %298 = vst [vmem:[#allocation2] sm:$0xff] %v297_v1 }
 0x1a4   :  { %409 = shalt.err (!%p406_p4)
}
 0x1a5   :  { %s410_s23 = scalar_lea.hbm %s659_s6, 128 }
 0x1a6   :  { %p411_p5 = scmp.ne.s32.totalorder %s659_s6, %s410_s23  ;;  %p414_p6 = scmp.lt.u32.totalorder %s410_s23, %s659_s6 }
 0x1a8   :  { %p416_p7 = pnand %p414_p6, %p411_p5 }
 0x1aa   :  { %419 = shalt.err (!%p416_p7)
}
 0x1ab   :  { %308 = dma.vmem_to_hbm [thread:$0]  %s306_s21, 128, %s659_s6, [#allocation3]  }
 0x1ac   :  { %420 = dma.done.wait [#allocation3], 128  }
 0x1ad   :  { %421 = vsyncadd [#allocation3], 4294967168 }
 0x1ae   :  { %312 = vsyncpa [#allocation3], 1 }

</bundles_post_ra>
